<compile_context>
chip_gen: v6e
topology: v6e:2x2x1
jax: 0.10.0
libtpu: 0.0.40
codegen_flags: <defaults>
</compile_context>

<pallas_src>
import functools

import jax
import jax.numpy as jnp
from jax.experimental import pallas as pl
from jax.experimental.pallas import tpu as pltpu


def _round_up(x, m):
    return ((x + m - 1) // m) * m


def _sigmoid(x):
    # single-EUP-op sigmoid: 0.5 * (tanh(x/2) + 1)
    return 0.5 * (jnp.tanh(0.5 * x) + 1.0)


# ----------------------------------------------------------------------------
# Pallas kernel: the prednet hot path, one batch tile per grid step
# ----------------------------------------------------------------------------
def prednet_kernel(se_ref, knr_ref, kn1_ref, kn2_ref, w_se_ref, w3_ref, b3_ref,
                   out_ref, *, tanh_dtype):
    tb, kg, p = knr_ref.shape          # batch tile, packed kn rows, pack factor
    lanes = kn1_ref.shape[1]           # 128 (or round_up(K, 128) when K > 128)

    # --- MXU: fused stu/exer projection; outputs already lane-tiled P times ---
    se_proj = jnp.dot(se_ref[...], w_se_ref[...],
                      preferred_element_type=jnp.float32)            # (TB, 2*lanes)
    stu_t = se_proj[:, :lanes].astype(tanh_dtype)                     # (TB, lanes)
    exer_t = se_proj[:, lanes:].astype(tanh_dtype)

    kn1 = kn1_ref[...].astype(tanh_dtype)                             # (kg, lanes)
    kn2 = kn2_ref[...].astype(tanh_dtype)

    # --- EUP hot path: one add + one tanh per (TB, kg, lanes) element ---------
    # (the 0.5 of sigmoid(x) = 0.5*tanh(x/2) + 0.5 is folded into the weights)
    t1 = jnp.tanh(stu_t[:, None, :] + kn1[None, :, :])                # (TB, kg, lanes)
    t2 = jnp.tanh(exer_t[:, None, :] + kn2[None, :, :])

    # --- MXU: per-kn-index W3 reduce via block-diagonal (lanes, P) weights ----
    # reshape only merges/splits sublane-aligned leading dims (layout no-op).
    w3b = w3_ref[...].astype(tanh_dtype)
    pref = jnp.dot(t1.reshape(tb * kg, lanes), w3b,
                   preferred_element_type=jnp.float32)                # (TB*kg, P)
    diff = jnp.dot(t2.reshape(tb * kg, lanes), w3b,
                   preferred_element_type=jnp.float32)

    o = _sigmoid((pref - diff + b3_ref[0, 0]).reshape(tb, kg, p))     # (TB, kg, P)

    knr = knr_ref[...]                                                # (TB, kg, P)
    # NOTE: mirrors the PyTorch module — no guard against all-zero kn_r rows
    # (padded batch rows produce NaN here; they are sliced off in the wrapper).
    sum_out = jnp.sum(jnp.sum(o * knr, axis=-1), axis=-1)             # (TB,)
    count = jnp.sum(jnp.sum(knr, axis=-1), axis=-1)                   # (TB,)
    out_ref[...] = (sum_out / count)[None, :]                         # lane-dense (1, TB)


# ----------------------------------------------------------------------------
# Wrapper: padding, lane-packing, weight folding, pallas_call
# ----------------------------------------------------------------------------
def prednet_forward(batch_stu_emb, batch_exer_emb, kn_emb2, kn_r,
                    W1, W2, W3, b3, *, tile_b=256, use_bf16_tanh=False):
    f32 = jnp.float32
    B, K = batch_stu_emb.shape

    W1 = jnp.asarray(W1, f32)
    W2 = jnp.asarray(W2, f32)
    W3 = jnp.asarray(W3, f32)
    kn = jnp.asarray(kn_emb2, f32)

    # ---- derived padded sizes -------------------------------------------------
    Kin = _round_up(K, 128)                 # contraction dim of the se matmul
    if K >= 128:
        L, P = _round_up(K, 128), 1         # no lane packing needed
    else:
        L, P = 128, 128 // K                # pack P kn-indices per vreg row
    Kg = (K + P - 1) // P                   # packed kn rows
    Kgp = _round_up(Kg, 8)                  # sublane aligned
    KiP = Kgp * P                           # total kn-index slots carried

    # batch tile: lane-dense output block requires TB % 128 == 0 or TB == Bp
    B8 = _round_up(B, 8)
    TB = B8 if B8 <= tile_b else _round_up(tile_b, 128)
    Bp = _round_up(B, TB)
    grid = (Bp // TB,)
    # TODO(synk): on v7x (2 TensorCores) a length-1 grid leaves one core idle;
    # large-K / tiny-B cases could additionally split the kn-index axis.

    half = f32(0.5)

    # ---- grid-invariant constants (hoisted out of the kernel) ------------------
    # kn-side projections of Linear1 / Linear2 (0.5 of the tanh-sigmoid folded in)
    kn1 = half * (kn @ W1[:, K:].T)                        # (K, K)
    kn2 = half * (kn @ W2[:, K:].T)                        # (K, K)

    def pack_rows(x):
        # (K, K) -> (Kgp, L): row g carries kn-indices g*P .. g*P+P-1 side by
        # side along lanes (K lanes each); padded slots / lanes are zero.
        xp = jnp.pad(x, ((0, KiP - K), (0, 0)))            # (KiP, K)
        xp = xp.reshape(Kgp, P * K)
        return jnp.pad(xp, ((0, 0), (0, L - P * K)))       # (Kgp, L)

    kn1_pack = pack_rows(kn1)
    kn2_pack = pack_rows(kn2)

    # block-diagonal W3 (0.5 folded): column p holds W3 in rows [p*K, p*K+K)
    w3_blk = jnp.kron(jnp.eye(P, dtype=f32), half * W3.T)  # (P*K, P)
    w3_blk = jnp.pad(w3_blk, ((0, L - P * K), (0, 0)))     # (L, P)

    # stu/exer projection weights of Linear1 / Linear2; output columns tiled P
    # times so the se matmul directly produces the lane-packed layout.
    def proj_w(Wa):                                        # Wa: (K, K)
        wt = jnp.tile(half * Wa.T, (1, P))                 # (K, P*K)
        return jnp.pad(wt, ((0, Kin - K), (0, L - P * K))) # (Kin, L)

    w1a = proj_w(W1[:, :K])
    w2a = proj_w(W2[:, :K])
    zero = jnp.zeros((Kin, L), f32)
    w_se = jnp.concatenate(
        [jnp.concatenate([w1a, zero], axis=1),
         jnp.concatenate([zero, w2a], axis=1)], axis=0)    # (2*Kin, 2*L)

    b3r = jnp.asarray(b3, f32).reshape(1, 1)               # scalar -> SMEM

    # ---- per-batch inputs -------------------------------------------------------
    def pad2(x, r, c):
        x = jnp.asarray(x, f32)
        return jnp.pad(x, ((0, r - x.shape[0]), (0, c - x.shape[1])))

    se = jnp.concatenate([pad2(batch_stu_emb, Bp, Kin),
                          pad2(batch_exer_emb, Bp, Kin)], axis=1)     # (Bp, 2*Kin)
    knr_pack = pad2(kn_r, Bp, KiP).reshape(Bp, Kgp, P)                # packed (g, p) order

    # ---- cost estimate (EUP-heavy kernel; helps XLA overlap surrounding ops) ----
    n_tanh = 2 * Bp * Kgp * L + Bp * Kgp * P
    cost = pl.CostEstimate(
        flops=int(2 * Bp * (2 * Kin) * (2 * L)      # se projection
                  + 2 * 2 * Bp * Kgp * L * P        # two W3 reduces
                  + 6 * Bp * Kgp * L),              # adds / sigmoid glue (approx)
        transcendentals=int(n_tanh),
        bytes_accessed=int(4 * (se.size + knr_pack.size + kn1_pack.size
                                + kn2_pack.size + w_se.size + w3_blk.size + Bp)),
    )

    kernel = functools.partial(
        prednet_kernel,
        tanh_dtype=jnp.bfloat16 if use_bf16_tanh else jnp.float32)
    # use_bf16_tanh: ~2x EUP throughput on v6e/v7x only (relax tolerance);
    # keep False on v5e (no bf16 VPU/EUP) and for bit-close f32 verification.

    const2 = lambda r, c: pl.BlockSpec((r, c), lambda i: (0, 0))
    # TODO(synk): on v7x (64 MiB VMEM) the constant specs could additionally use
    # pipeline_mode=pl.Buffered(1) to drop their second buffer; negligible at K=32.

    out = pl.pallas_call(
        kernel,
        out_shape=jax.ShapeDtypeStruct((1, Bp), f32),
        grid_spec=pltpu.PrefetchScalarGridSpec(
            num_scalar_prefetch=0,
            grid=grid,
            in_specs=[
                pl.BlockSpec((TB, 2 * Kin), lambda i: (i, 0)),        # [stu | exer]
                pl.BlockSpec((TB, Kgp, P), lambda i: (i, 0, 0)),      # kn_r (packed)
                const2(Kgp, L),                                        # 0.5 * kn@W1b.T packed
                const2(Kgp, L),                                        # 0.5 * kn@W2b.T packed
                const2(2 * Kin, 2 * L),                                # blockdiag proj weights
                const2(L, P),                                          # blockdiag 0.5*W3
                pl.BlockSpec(memory_space=pltpu.MemorySpace.SMEM),     # b3 scalar
            ],
            out_specs=pl.BlockSpec((1, TB), lambda i: (0, i)),         # lane-dense
        ),
        compiler_params=pltpu.CompilerParams(
            dimension_semantics=("parallel",),
            vmem_limit_bytes=48 * 1024 * 1024,
        ),
        cost_estimate=cost,
    )(se, knr_pack, kn1_pack, kn2_pack, w_se, w3_blk, b3r)

    return out[0, :B].reshape(B, 1)


# ----------------------------------------------------------------------------
# Pure-JAX reference (mirrors the PyTorch forward literally, for verification)
# ----------------------------------------------------------------------------
def reference_forward(batch_stu_emb, batch_exer_emb, kn_emb2, kn_r, W1, W2, W3, b3):
    B, K = batch_stu_emb.shape
    stu_vec = jnp.broadcast_to(batch_stu_emb[:, None, :], (B, K, K))
    exer_vec = jnp.broadcast_to(batch_exer_emb[:, None, :], (B, K, K))
    kn_vec = jnp.broadcast_to(kn_emb2[None, :, :], (B, K, K))
    pref = jax.nn.sigmoid(jnp.concatenate([stu_vec, kn_vec], axis=2) @ W1.T)
    diff = jax.nn.sigmoid(jnp.concatenate([exer_vec, kn_vec], axis=2) @ W2.T)
    o = jax.nn.sigmoid((pref - diff) @ W3.T + b3)          # (B, K, 1)
    sum_out = jnp.sum(o * kn_r[:, :, None], axis=1)        # (B, 1)
    count = jnp.sum(kn_r, axis=1, keepdims=True)           # (B, 1)
    return sum_out / count


# ----------------------------------------------------------------------------
# Deterministic parameter init (xavier_normal, matching nn.init.xavier_normal_)
# ----------------------------------------------------------------------------
def xavier_normal(key, shape):
    fan_out, fan_in = shape[0], shape[1]
    std = (2.0 / (fan_in + fan_out)) ** 0.5
    return std * jax.random.normal(key, shape, dtype=jnp.float32)


if __name__ == "__main__":
    # Small synthetic problem: student_n=8, exer_n=8, knowledge_n=32, batch=4
    student_n, exer_n, knowledge_n, B = 8, 8, 32, 4
    K = knowledge_n

    keys = jax.random.split(jax.random.PRNGKey(0), 10)

    # Embedding tables ("weight" params -> xavier_normal in the module)
    student_emb = xavier_normal(keys[0], (student_n, K))
    exercise_emb = xavier_normal(keys[1], (exer_n, K))
    knowledge_emb = xavier_normal(keys[2], (K, K))

    # prednet weights
    W1 = xavier_normal(keys[3], (K, 2 * K))      # prednet_full1 (no bias)
    W2 = xavier_normal(keys[4], (K, 2 * K))      # prednet_full2 (no bias)
    W3 = xavier_normal(keys[5], (1, K))          # prednet_full3 weight
    b3 = 0.01 * jax.random.normal(keys[6], (1,), dtype=jnp.float32)  # full3 bias

    # Batch inputs
    stu_id = jax.random.randint(keys[7], (B,), 0, student_n)
    exer_id = jax.random.randint(keys[8], (B,), 0, exer_n)
    kn_r = (jax.random.uniform(keys[9], (B, K)) < 0.3).astype(jnp.float32)
    kn_r = kn_r.at[:, 0].set(1.0)  # guarantee at least one concept per row

    # ---- module forward (args.id == 0 branch) ----
    all_stu_emb = student_emb          # student_emb(stu_index)
    exer_emb = exercise_emb            # exercise_emb(exer_index)
    kn_emb = knowledge_emb             # knowledge_emb(k_index)

    # TODO(synk): FusionLayer1 / FusionLayer2 (graph fusion) not provided -> identity
    kn_emb1, exer_emb1, all_stu_emb1 = kn_emb, exer_emb, all_stu_emb
    kn_emb2, exer_emb2, all_stu_emb2 = kn_emb1, exer_emb1, all_stu_emb1
    ssl_loss = 0.0

    batch_stu_emb = all_stu_emb2[stu_id]     # (B, K)   gather glue in plain JAX
    batch_exer_emb = exer_emb2[exer_id]      # (B, K)

    output = prednet_forward(batch_stu_emb, batch_exer_emb, kn_emb2, kn_r,
                             W1, W2, W3, b3)
    output = jax.block_until_ready(output)

    ref = reference_forward(batch_stu_emb, batch_exer_emb, kn_emb2, kn_r,
                            W1, W2, W3, b3)
    assert output.shape == (B, 1)
    assert jnp.allclose(output, ref, atol=1e-4, rtol=1e-4), (output, ref)

    print("KERNEL_OK")
</pallas_src>

<mosaic_0001>
module attributes {stable_mosaic.version = 11 : i64} {
  func.func @prednet_kernel(%arg0: i32, %arg1: memref<8x256xf32, #tpu.memory_space<vmem>>, %arg2: memref<8x8x4xf32, #tpu.memory_space<vmem>>, %arg3: memref<8x128xf32, #tpu.memory_space<vmem>>, %arg4: memref<8x128xf32, #tpu.memory_space<vmem>>, %arg5: memref<256x256xf32, #tpu.memory_space<vmem>>, %arg6: memref<128x4xf32, #tpu.memory_space<vmem>>, %arg7: memref<1x1xf32, #tpu.memory_space<smem>>, %arg8: memref<1x8xf32, #tpu.memory_space<vmem>>) attributes {dimension_semantics = [#tpu.dimension_semantics<parallel>], iteration_bounds = array<i64: 1>, scalar_prefetch = 0 : i64, scratch_operands = 0 : i64, tpu.core_type = #tpu.core_type<tc>, window_params = [{transform_indices = @transform_0, window_bounds = array<i64: 8, 256>}, {transform_indices = @transform_1, window_bounds = array<i64: 8, 8, 4>}, {pipeline_mode = #tpu.pipeline_mode<synchronous>, transform_indices = @transform_2, window_bounds = array<i64: 8, 128>}, {pipeline_mode = #tpu.pipeline_mode<synchronous>, transform_indices = @transform_3, window_bounds = array<i64: 8, 128>}, {pipeline_mode = #tpu.pipeline_mode<synchronous>, transform_indices = @transform_4, window_bounds = array<i64: 256, 256>}, {pipeline_mode = #tpu.pipeline_mode<synchronous>, transform_indices = @transform_5, window_bounds = array<i64: 128, 4>}, {transform_indices = @transform_6, window_bounds = array<i64: 1, 1>}, {transform_indices = @transform_7, window_bounds = array<i64: 1, 8>}]} {
    %c0 = arith.constant 0 : index
    %c0_0 = arith.constant 0 : index
    %0 = vector.load %arg1[%c0, %c0_0] : memref<8x256xf32, #tpu.memory_space<vmem>>, vector<8x256xf32>
    %c0_1 = arith.constant 0 : index
    %c0_2 = arith.constant 0 : index
    %1 = vector.load %arg5[%c0_1, %c0_2] : memref<256x256xf32, #tpu.memory_space<vmem>>, vector<256x256xf32>
    %cst = arith.constant dense<0.000000e+00> : vector<8x256xf32>
    %2 = tpu.matmul %0, %1, %cst {dimension_numbers = #tpu.dot_dimension_numbers<[1], [0], [0], [1], [0, 0, 1, 1], [], []>} : vector<8x256xf32>, vector<256x256xf32>, vector<8x256xf32> -> vector<8x256xf32>
    %3 = vector.extract_strided_slice %2 {offsets = [0, 0], sizes = [8, 128], strides = [1, 1]} : vector<8x256xf32> to vector<8x128xf32>
    %4 = vector.extract_strided_slice %2 {offsets = [0, 128], sizes = [8, 128], strides = [1, 1]} : vector<8x256xf32> to vector<8x128xf32>
    %c0_3 = arith.constant 0 : index
    %c0_4 = arith.constant 0 : index
    %5 = vector.load %arg3[%c0_3, %c0_4] : memref<8x128xf32, #tpu.memory_space<vmem>>, vector<8x128xf32>
    %c0_5 = arith.constant 0 : index
    %c0_6 = arith.constant 0 : index
    %6 = vector.load %arg4[%c0_5, %c0_6] : memref<8x128xf32, #tpu.memory_space<vmem>>, vector<8x128xf32>
    %7 = vector.shape_cast %3 : vector<8x128xf32> to vector<8x1x128xf32>
    %8 = vector.shape_cast %5 : vector<8x128xf32> to vector<1x8x128xf32>
    %9 = vector.broadcast %7 : vector<8x1x128xf32> to vector<8x8x128xf32>
    %10 = vector.broadcast %8 : vector<1x8x128xf32> to vector<8x8x128xf32>
    %11 = arith.addf %9, %10 : vector<8x8x128xf32>
    %12 = math.tanh %11 : vector<8x8x128xf32>
    %13 = vector.shape_cast %4 : vector<8x128xf32> to vector<8x1x128xf32>
    %14 = vector.shape_cast %6 : vector<8x128xf32> to vector<1x8x128xf32>
    %15 = vector.broadcast %13 : vector<8x1x128xf32> to vector<8x8x128xf32>
    %16 = vector.broadcast %14 : vector<1x8x128xf32> to vector<8x8x128xf32>
    %17 = arith.addf %15, %16 : vector<8x8x128xf32>
    %18 = math.tanh %17 : vector<8x8x128xf32>
    %c0_7 = arith.constant 0 : index
    %c0_8 = arith.constant 0 : index
    %19 = vector.load %arg6[%c0_7, %c0_8] : memref<128x4xf32, #tpu.memory_space<vmem>>, vector<128x4xf32>
    %20 = vector.shape_cast %12 : vector<8x8x128xf32> to vector<64x128xf32>
    %cst_9 = arith.constant dense<0.000000e+00> : vector<64x4xf32>
    %21 = tpu.matmul %20, %19, %cst_9 {dimension_numbers = #tpu.dot_dimension_numbers<[1], [0], [0], [1], [0, 0, 1, 1], [], []>} : vector<64x128xf32>, vector<128x4xf32>, vector<64x4xf32> -> vector<64x4xf32>
    %22 = vector.shape_cast %18 : vector<8x8x128xf32> to vector<64x128xf32>
    %cst_10 = arith.constant dense<0.000000e+00> : vector<64x4xf32>
    %23 = tpu.matmul %22, %19, %cst_10 {dimension_numbers = #tpu.dot_dimension_numbers<[1], [0], [0], [1], [0, 0, 1, 1], [], []>} : vector<64x128xf32>, vector<128x4xf32>, vector<64x4xf32> -> vector<64x4xf32>
    %24 = arith.subf %21, %23 : vector<64x4xf32>
    %c0_11 = arith.constant 0 : index
    %c0_12 = arith.constant 0 : index
    %25 = memref.load %arg7[%c0_11, %c0_12] : memref<1x1xf32, #tpu.memory_space<smem>>
    %26 = vector.broadcast %25 : f32 to vector<64x4xf32>
    %27 = arith.addf %24, %26 : vector<64x4xf32>
    %28 = vector.shape_cast %27 : vector<64x4xf32> to vector<8x8x4xf32>
    %cst_13 = arith.constant 5.000000e-01 : f32
    %29 = vector.broadcast %cst_13 : f32 to vector<8x8x4xf32>
    %30 = arith.mulf %29, %28 : vector<8x8x4xf32>
    %31 = math.tanh %30 : vector<8x8x4xf32>
    %cst_14 = arith.constant 1.000000e+00 : f32
    %32 = vector.broadcast %cst_14 : f32 to vector<8x8x4xf32>
    %33 = arith.addf %31, %32 : vector<8x8x4xf32>
    %cst_15 = arith.constant 5.000000e-01 : f32
    %34 = vector.broadcast %cst_15 : f32 to vector<8x8x4xf32>
    %35 = arith.mulf %34, %33 : vector<8x8x4xf32>
    %c0_16 = arith.constant 0 : index
    %c0_17 = arith.constant 0 : index
    %c0_18 = arith.constant 0 : index
    %36 = vector.load %arg2[%c0_16, %c0_17, %c0_18] : memref<8x8x4xf32, #tpu.memory_space<vmem>>, vector<8x8x4xf32>
    %37 = arith.mulf %35, %36 : vector<8x8x4xf32>
    %cst_19 = arith.constant dense<0.000000e+00> : vector<8x8xf32>
    %38 = vector.multi_reduction <add>, %37, %cst_19 [2] : vector<8x8x4xf32> to vector<8x8xf32>
    %cst_20 = arith.constant dense<0.000000e+00> : vector<8xf32>
    %39 = vector.multi_reduction <add>, %38, %cst_20 [1] : vector<8x8xf32> to vector<8xf32>
    %cst_21 = arith.constant dense<0.000000e+00> : vector<8x8xf32>
    %40 = vector.multi_reduction <add>, %36, %cst_21 [2] : vector<8x8x4xf32> to vector<8x8xf32>
    %cst_22 = arith.constant dense<0.000000e+00> : vector<8xf32>
    %41 = vector.multi_reduction <add>, %40, %cst_22 [1] : vector<8x8xf32> to vector<8xf32>
    %42 = arith.divf %39, %41 : vector<8xf32>
    %43 = vector.shape_cast %42 : vector<8xf32> to vector<1x8xf32>
    %c0_23 = arith.constant 0 : index
    %c0_24 = arith.constant 0 : index
    %44 = vector.load %arg8[%c0_23, %c0_24] : memref<1x8xf32, #tpu.memory_space<vmem>>, vector<1x8xf32>
    tpu.vector_store %arg8[%c0_23, %c0_24], %43 {strides = array<i32>} : memref<1x8xf32, #tpu.memory_space<vmem>>, vector<1x8xf32>,
    return
  }
  func.func @transform_0(%arg0: i32) -> (i32, i32) {
    %c0_i32 = arith.constant 0 : i32
    %c0_i32_0 = arith.constant 0 : i32
    return %arg0, %c0_i32 : i32, i32
  }
  func.func @transform_1(%arg0: i32) -> (i32, i32, i32) {
    %c0_i32 = arith.constant 0 : i32
    %c0_i32_0 = arith.constant 0 : i32
    %c0_i32_1 = arith.constant 0 : i32
    return %arg0, %c0_i32, %c0_i32_0 : i32, i32, i32
  }
  func.func @transform_2(%arg0: i32) -> (i32, i32) {
    %c0_i32 = arith.constant 0 : i32
    %c0_i32_0 = arith.constant 0 : i32
    %c0_i32_1 = arith.constant 0 : i32
    return %c0_i32, %c0_i32_0 : i32, i32
  }
  func.func @transform_3(%arg0: i32) -> (i32, i32) {
    %c0_i32 = arith.constant 0 : i32
    %c0_i32_0 = arith.constant 0 : i32
    %c0_i32_1 = arith.constant 0 : i32
    return %c0_i32, %c0_i32_0 : i32, i32
  }
  func.func @transform_4(%arg0: i32) -> (i32, i32) {
    %c0_i32 = arith.constant 0 : i32
    %c0_i32_0 = arith.constant 0 : i32
    %c0_i32_1 = arith.constant 0 : i32
    return %c0_i32, %c0_i32_0 : i32, i32
  }
  func.func @transform_5(%arg0: i32) -> (i32, i32) {
    %c0_i32 = arith.constant 0 : i32
    %c0_i32_0 = arith.constant 0 : i32
    %c0_i32_1 = arith.constant 0 : i32
    return %c0_i32, %c0_i32_0 : i32, i32
  }
  func.func @transform_6(%arg0: i32) -> (i32, i32) {
    %c0_i32 = arith.constant 0 : i32
    %c0_i32_0 = arith.constant 0 : i32
    %c0_i32_1 = arith.constant 0 : i32
    return %c0_i32, %c0_i32_0 : i32, i32
  }
  func.func @transform_7(%arg0: i32) -> (i32, i32) {
    %c0_i32 = arith.constant 0 : i32
    %c0_i32_0 = arith.constant 0 : i32
    return %c0_i32, %arg0 : i32, i32
  }
}

</mosaic_0001>

<bundles_post_ra>
// kernel: tpu_custom_call.1
= control target key start
LH: loop header
LB: loop body
LE: loop exit
PB: predicated region body
PF: predicated region fallthrough
CT: control target
= control target key end

     0   :  { %13 = vsyncpa [#allocation4], 0  ;;  %s1465_s0 = inlined_call_operand.vmem [shape: f32[8,256], index: 0, kind: input, shape index: {}]   ;;  %s1466_s1 = inlined_call_operand.vmem [shape: f32[8,8,4], index: 1, kind: input, shape index: {}]   ;;  %s1467_s2 = inlined_call_operand.vmem [shape: f32[8,128], index: 2, kind: input, shape index: {}]   ;;  %s1468_s3 = inlined_call_operand.vmem [shape: f32[8,128], index: 3, kind: input, shape index: {}]   ;;  %s1469_s4 = inlined_call_operand.hbm [shape: f32[256,256], index: 4, kind: input, shape index: {}]   ;;  %s1470_s5 = inlined_call_operand.vmem [shape: f32[128,4], index: 5, kind: input, shape index: {}]   ;;  %s1471_s6 = inlined_call_operand.<no memory space> [shape: f32[1,1], index: 6, kind: input, shape index: {}]   ;;  %s1472_s7 = inlined_call_operand.hbm [shape: f32[1,8], index: 7, kind: output, shape index: {}]  }
   0x1   :  { %14 = vsyncpa [#allocation5], 0  ;;  %s1106_s24 = smov [#allocation3]  }
   0x2   :  { %s28_s25 = sshll.u32 %s1106_s24, 4  ;;  %s29_s25 = int_to_ptr.vmem [resolvable:$true] %s28_s25 }
   0x3   :  { %s1070_s26 = scalar_lea.vmem %s29_s25, 8192  ;;  %p1075_p1 = scmp.lt.s32.totalorder %s29_s25, %s29_s25 }
   0x4   :  { %p1071_p0 = scmp.ne.s32.totalorder %s29_s25, %s1070_s26  ;;  %p1076_p2 = scmp.lt.s32.totalorder %s1070_s26, %s1070_s26 }
   0x6   :  { %p1077_p3 = por %p1076_p2, %p1075_p1 }
   0x8   :  { %p1078_p4 = pnand %p1077_p3, %p1071_p0 }
   0xa   :  { %1081 = shalt.err (!%p1078_p4)
}
   0xb   :  { %s1107_s27 = smov 256   ;;  %s1108_s28 = smov 16  }
   0xc   :  { %34 = dma.hbm_to_vmem [thread:$0]  %s1469_s4, 8192, %s29_s25, [#allocation4], %s1107_s27, %s1107_s27, %s1108_s28  }
   0xd   :  { %1102 = dma.done.wait [#allocation4], 8192  }
   0xe   :  { %1103 = vsyncadd [#allocation4], 4294959104  ;;  %v75_v0 = vld [vmem:[#allocation3 + $0xf8] sm:$0xff]  ;;  %v74_v1 = vld [vmem:[#allocation3 + $0xf0] sm:$0xff]  ;;  %vm685_vm0 = vcmask 31744   ;;  %vm752_vm1 = vcmask 1041409  }
   0xf   :  { %v73_v2 = vld [vmem:[#allocation3 + $0xe8] sm:$0xff]  ;;  %108 = vmatprep.subr.mxu0 %v75_v0  ;;  %v72_v3 = vld [vmem:[#allocation3 + $0xe0] sm:$0xff]  ;;  %v71_v4 = vld [vmem:[#allocation3 + $0xd8] sm:$0xff]  ;;  %vm754_vm2 = vcmask 1042434   ;;  %vm756_vm3 = vcmask 1043459   ;;  %vm758_vm4 = vcmask 1044484  }
  0x10   :  { %109 = vmatpush1.msra.mxu0 %v74_v1  ;;  %v70_v5 = vld [vmem:[#allocation3 + $0xd0] sm:$0xff]  ;;  %v69_v6 = vld [vmem:[#allocation3 + $0xc8] sm:$0xff]  ;;  %v68_v7 = vld [vmem:[#allocation3 + $0xc0] sm:$0xff]  ;;  %vm760_vm5 = vcmask 1045509   ;;  %vm762_vm6 = vcmask 1046534   ;;  %vm764_vm7 = vcmask 1047559  }
  0x11   :  { %110 = vmatprep.subr.mxu0 %v73_v2  ;;  %v67_v8 = vld [vmem:[#allocation3 + $0xb8] sm:$0xff]  ;;  %v66_v9 = vld [vmem:[#allocation3 + $0xb0] sm:$0xff]  ;;  %v65_v10 = vld [vmem:[#allocation3 + $0xa8] sm:$0xff]  ;;  %vm767_vm8 = vcmask 64512   ;;  %vm854_vm9 = vcmask 57344  }
  0x12   :  { %111 = vmatpush1.msra.mxu0 %v72_v3  ;;  %v64_v11 = vld [vmem:[#allocation3 + $0xa0] sm:$0xff]  ;;  %v63_v12 = vld [vmem:[#allocation3 + $0x98] sm:$0xff]  ;;  %v62_v13 = vld [vmem:[#allocation3 + $0x90] sm:$0xff] }
  0x13   :  { %112 = vmatprep.subr.mxu0 %v71_v4  ;;  %v61_v14 = vld [vmem:[#allocation3 + $0x88] sm:$0xff]  ;;  %v60_v15 = vld [vmem:[#allocation3 + $0x80] sm:$0xff]  ;;  %v59_v16 = vld [vmem:[#allocation3 + $0x78] sm:$0xff] }
  0x14   :  { %113 = vmatpush1.msra.mxu0 %v70_v5  ;;  %v58_v17 = vld [vmem:[#allocation3 + $0x70] sm:$0xff]  ;;  %v57_v18 = vld [vmem:[#allocation3 + $0x68] sm:$0xff]  ;;  %v56_v19 = vld [vmem:[#allocation3 + $0x60] sm:$0xff] }
  0x15   :  { %114 = vmatprep.subr.mxu0 %v69_v6  ;;  %v55_v20 = vld [vmem:[#allocation3 + $0x58] sm:$0xff]  ;;  %v54_v21 = vld [vmem:[#allocation3 + $0x50] sm:$0xff]  ;;  %v53_v22 = vld [vmem:[#allocation3 + $0x48] sm:$0xff] }
  0x16   :  { %115 = vmatpush1.msra.mxu0 %v68_v7  ;;  %v52_v23 = vld [vmem:[#allocation3 + $0x40] sm:$0xff]  ;;  %v43_v24 = vld [vmem:[%s1465_s0 + $0x8] sm:$0xff]  ;;  %v51_v25 = vld [vmem:[#allocation3 + $0x38] sm:$0xff] }
  0x17   :  { %116 = vmatprep.subr.mxu0 %v67_v8  ;;  %172 = vmatprep.mubr.f32.mxu0 %v43_v24  ;;  %v1160_v26 = vld [vmem:[%s1470_s5 + $0x78] sm:$0xff]  ;;  %v1165_v27 = vld [vmem:[%s1470_s5 + $0x70] sm:$0xff]  ;;  %v49_v29 = vld [vmem:[#allocation3 + $0x28] sm:$0xff] }
  0x18   :  { %117 = vmatpush1.msra.mxu0 %v66_v9  ;;  %v50_v28 = vld [vmem:[#allocation3 + $0x30] sm:$0xff]  ;;  %919 = vmatprep.subr.mxu1 %v1160_v26  ;;  %v1172_v30 = vld [vmem:[%s1470_s5 + $0x68] sm:$0xff]  ;;  %v48_v31 = vld [vmem:[#allocation3 + $0x20] sm:$0xff]  ;;  %v186_v9 = vlaneseq }
  0x19   :  { %118 = vmatprep.subr.mxu0 %v65_v10  ;;  %920 = vmatpush3.msra.mxu1 %v1160_v26  ;;  %v47_v32 = vld [vmem:[#allocation3 + $0x18] sm:$0xff]  ;;  %v1179_v33 = vld [vmem:[%s1470_s5 + $0x60] sm:$0xff]  ;;  %v46_v34 = vld [vmem:[#allocation3 + $0x10] sm:$0xff] }
  0x1a   :  { %119 = vmatpush1.msra.mxu0 %v64_v11  ;;  %921 = vmatprep.subr.mxu1 %v1165_v27  ;;  %v45_v35 = vld [vmem:[#allocation3 + $0x8] sm:$0xff]  ;;  %v44_v36 = vld [vmem:[#allocation3] sm:$0xff]  ;;  %v107_v37 = vld [vmem:[#allocation3 + $0x1f8] sm:$0xff] }
  0x1b   :  { %120 = vmatprep.subr.mxu0 %v63_v12  ;;  %922 = vmatpush3.msra.mxu1 %v1165_v27  ;;  %v106_v38 = vld [vmem:[#allocation3 + $0x1f0] sm:$0xff]  ;;  %v105_v39 = vld [vmem:[#allocation3 + $0x1e8] sm:$0xff]  ;;  %v104_v40 = vld [vmem:[#allocation3 + $0x1e0] sm:$0xff]  ;;  %v187_v12 = vshrl.u32 %v186_v9, 7 }
  0x1c   :  { %121 = vmatpush1.msra.mxu0 %v62_v13  ;;  %923 = vmatprep.subr.mxu1 %v1172_v30  ;;  %v103_v41 = vld [vmem:[#allocation3 + $0x1d8] sm:$0xff]  ;;  %v102_v42 = vld [vmem:[#allocation3 + $0x1d0] sm:$0xff]  ;;  %v101_v43 = vld [vmem:[#allocation3 + $0x1c8] sm:$0xff]  ;;  %v719_v13 = vand.u32 127, %v186_v9 }
  0x1d   :  { %122 = vmatprep.subr.mxu0 %v61_v14  ;;  %924 = vmatpush3.msra.mxu1 %v1172_v30  ;;  %v100_v44 = vld [vmem:[#allocation3 + $0x1c0] sm:$0xff]  ;;  %v99_v45 = vld [vmem:[#allocation3 + $0x1b8] sm:$0xff]  ;;  %v98_v46 = vld [vmem:[#allocation3 + $0x1b0] sm:$0xff] }
  0x1e   :  { %123 = vmatpush1.msra.mxu0 %v60_v15  ;;  %925 = vmatprep.subr.mxu1 %v1179_v33  ;;  %v97_v47 = vld [vmem:[#allocation3 + $0x1a8] sm:$0xff]  ;;  %v96_v48 = vld [vmem:[#allocation3 + $0x1a0] sm:$0xff]  ;;  %v95_v49 = vld [vmem:[#allocation3 + $0x198] sm:$0xff]  ;;  %v1228_v15 = vsub.s32 %v719_v13, %v187_v12 }
  0x1f   :  { %124 = vmatprep.subr.mxu0 %v59_v16  ;;  %926 = vmatpush3.msra.mxu1 %v1179_v33  ;;  %v94_v50 = vld [vmem:[#allocation3 + $0x190] sm:$0xff]  ;;  %v93_v51 = vld [vmem:[#allocation3 + $0x188] sm:$0xff]  ;;  %v92_v52 = vld [vmem:[#allocation3 + $0x180] sm:$0xff] }
  0x20   :  { %125 = vmatpush1.msra.mxu0 %v58_v17  ;;  %v91_v53 = vld [vmem:[#allocation3 + $0x178] sm:$0xff]  ;;  %v90_v54 = vld [vmem:[#allocation3 + $0x170] sm:$0xff]  ;;  %v89_v55 = vld [vmem:[#allocation3 + $0x168] sm:$0xff] }
  0x21   :  { %126 = vmatprep.subr.mxu0 %v57_v18  ;;  %v88_v56 = vld [vmem:[#allocation3 + $0x160] sm:$0xff]  ;;  %v87_v57 = vld [vmem:[#allocation3 + $0x158] sm:$0xff]  ;;  %v86_v58 = vld [vmem:[#allocation3 + $0x150] sm:$0xff] }
  0x22   :  { %127 = vmatpush1.msra.mxu0 %v56_v19  ;;  %v85_v59 = vld [vmem:[#allocation3 + $0x148] sm:$0xff]  ;;  %v84_v60 = vld [vmem:[#allocation3 + $0x140] sm:$0xff]  ;;  %v83_v61 = vld [vmem:[#allocation3 + $0x138] sm:$0xff] }
  0x23   :  { %128 = vmatprep.subr.mxu0 %v55_v20  ;;  %v82_v62 = vld [vmem:[#allocation3 + $0x130] sm:$0xff]  ;;  %v81_v63 = vld [vmem:[#allocation3 + $0x128] sm:$0xff]  ;;  %v80_v0 = vld [vmem:[#allocation3 + $0x120] sm:$0xff] }
  0x24   :  { %129 = vmatpush1.msra.mxu0 %v54_v21  ;;  %v79_v1 = vld [vmem:[#allocation3 + $0x118] sm:$0xff]  ;;  %v78_v2 = vld [vmem:[#allocation3 + $0x110] sm:$0xff]  ;;  %v77_v3 = vld [vmem:[#allocation3 + $0x108] sm:$0xff] }
  0x25   :  { %130 = vmatprep.subr.mxu0 %v53_v22  ;;  %v76_v4 = vld [vmem:[#allocation3 + $0x100] sm:$0xff]  ;;  %v1191_v6 = vld [vmem:[%s1470_s5 + $0x58] sm:$0xff]  ;;  %v1198_v7 = vld [vmem:[%s1470_s5 + $0x50] sm:$0xff]  ;;  %v1109_v22 = vmov 1966171168  }
  0x26   :  { %131 = vmatpush1.msra.mxu0 %v52_v23  ;;  %v42_v5 = vld [vmem:[%s1465_s0] sm:$0xff]  ;;  %927 = vmatprep.subr.mxu1 %v1191_v6  ;;  %v1205_v8 = vld [vmem:[%s1470_s5 + $0x48] sm:$0xff]  ;;  %v1219_v11 = vld [vmem:[%s1470_s5 + $0x38] sm:$0xff]  ;;  %v184_v23 = vunpack.c.l.s4 %v1109_v22 }
  0x27   :  { %132 = vmatprep.subr.mxu0 %v51_v25  ;;  %928 = vmatpush3.msra.mxu1 %v1191_v6  ;;  %v1212_v10 = vld [vmem:[%s1470_s5 + $0x40] sm:$0xff]  ;;  %v1226_v14 = vld [vmem:[%s1470_s5 + $0x30] sm:$0xff]  ;;  %v1235_v16 = vld [vmem:[%s1470_s5 + $0x28] sm:$0xff] }
  0x28   :  { %133 = vmatpush1.msra.mxu0 %v50_v28  ;;  %929 = vmatprep.subr.mxu1 %v1198_v7  ;;  %v1242_v17 = vld [vmem:[%s1470_s5 + $0x20] sm:$0xff]  ;;  %v1249_v18 = vld [vmem:[%s1470_s5 + $0x18] sm:$0xff]  ;;  %v1255_v19 = vld [vmem:[%s1470_s5 + $0x10] sm:$0xff]  ;;  %v185_v24 = vunpack.c.0.s8 %v184_v23 }
  0x29   :  { %134 = vmatprep.subr.mxu0 %v49_v29  ;;  %930 = vmatpush3.msra.mxu1 %v1198_v7  ;;  %v1261_v20 = vld [vmem:[%s1470_s5 + $0x8] sm:$0xff]  ;;  %v1268_v21 = vld [vmem:[%s1470_s5] sm:$0xff] }
  0x2a   :  { %135 = vmatpush1.msra.mxu0 %v48_v31  ;;  %931 = vmatprep.subr.mxu1 %v1205_v8  ;;  %v1275_v25 = vsub.s32 %v185_v24, %v187_v12 }
  0x2b   :  { %136 = vmatprep.subr.mxu0 %v47_v32  ;;  %932 = vmatpush3.msra.mxu1 %v1205_v8 }
  0x2c   :  { %137 = vmatpush1.msra.mxu0 %v46_v34  ;;  %933 = vmatprep.subr.mxu1 %v1212_v10 }
  0x2d   :  { %138 = vmatprep.subr.mxu0 %v45_v35  ;;  %934 = vmatpush3.msra.mxu1 %v1212_v10 }
  0x2e   :  { %139 = vmatpush1.msra.mxu0 %v44_v36  ;;  %935 = vmatprep.subr.mxu1 %v1219_v11 }
  0x2f   :  { %140 = vmatprep.subr.mxu0 %v107_v37  ;;  %936 = vmatpush3.msra.mxu1 %v1219_v11  ;;  %v1280_v37 = vsub.s32 0, %v187_v12 }
  0x30   :  { %141 = vmatpush2.msra.mxu0 %v106_v38  ;;  %937 = vmatprep.subr.mxu1 %v1226_v14 }
  0x31   :  { %142 = vmatprep.subr.mxu0 %v105_v39  ;;  %938 = vmatpush3.msra.mxu1 %v1226_v14 }
  0x32   :  { %143 = vmatpush2.msra.mxu0 %v104_v40  ;;  %939 = vmatprep.subr.mxu1 %v1235_v16 }
  0x33   :  { %144 = vmatprep.subr.mxu0 %v103_v41  ;;  %940 = vmatpush3.msra.mxu1 %v1235_v16 }
  0x34   :  { %145 = vmatpush2.msra.mxu0 %v102_v42  ;;  %941 = vmatprep.subr.mxu1 %v1242_v17  ;;  %v179_v42 = vld [vmem:[%s1467_s2] sm:$0xff] }
  0x35   :  { %146 = vmatprep.subr.mxu0 %v101_v43  ;;  %942 = vmatpush3.msra.mxu1 %v1242_v17 }
  0x36   :  { %147 = vmatpush2.msra.mxu0 %v100_v44  ;;  %943 = vmatprep.subr.mxu1 %v1249_v18 }
  0x37   :  { %148 = vmatprep.subr.mxu0 %v99_v45  ;;  %944 = vmatpush3.msra.mxu1 %v1249_v18 }
  0x38   :  { %149 = vmatpush2.msra.mxu0 %v98_v46  ;;  %945 = vmatprep.subr.mxu1 %v1255_v19 }
  0x39   :  { %150 = vmatprep.subr.mxu0 %v97_v47  ;;  %946 = vmatpush3.msra.mxu1 %v1255_v19 }
  0x3a   :  { %151 = vmatpush2.msra.mxu0 %v96_v48  ;;  %947 = vmatprep.subr.mxu1 %v1261_v20 }
  0x3b   :  { %152 = vmatprep.subr.mxu0 %v95_v49  ;;  %948 = vmatpush3.msra.mxu1 %v1261_v20 }
  0x3c   :  { %153 = vmatpush2.msra.mxu0 %v94_v50  ;;  %949 = vmatprep.subr.mxu1 %v1268_v21 }
  0x3d   :  { %154 = vmatprep.subr.mxu0 %v93_v51  ;;  %950 = vmatpush3.msra.mxu1 %v1268_v21 }
  0x3e   :  { %155 = vmatpush2.msra.mxu0 %v92_v52  ;;  %963 = vmatprep.subr.mxu1 %v1160_v26 }
  0x3f   :  { %156 = vmatprep.subr.mxu0 %v91_v53 }
  0x40   :  { %157 = vmatpush2.msra.mxu0 %v90_v54 }
  0x41   :  { %158 = vmatprep.subr.mxu0 %v89_v55 }
  0x42   :  { %159 = vmatpush2.msra.mxu0 %v88_v56 }
  0x43   :  { %160 = vmatprep.subr.mxu0 %v87_v57 }
  0x44   :  { %161 = vmatpush2.msra.mxu0 %v86_v58 }
  0x45   :  { %162 = vmatprep.subr.mxu0 %v85_v59 }
  0x46   :  { %163 = vmatpush2.msra.mxu0 %v84_v60 }
  0x47   :  { %164 = vmatprep.subr.mxu0 %v83_v61 }
  0x48   :  { %165 = vmatpush2.msra.mxu0 %v82_v62 }
  0x49   :  { %166 = vmatprep.subr.mxu0 %v81_v63 }
  0x4a   :  { %167 = vmatpush2.msra.mxu0 %v80_v0 }
  0x4b   :  { %168 = vmatprep.subr.mxu0 %v79_v1  ;;  %v1302_v1 = vld [vmem:[%s1468_s3] sm:$0xff] }
  0x4c   :  { %169 = vmatpush2.msra.mxu0 %v78_v2 }
  0x4d   :  { %170 = vmatprep.subr.mxu0 %v77_v3 }
  0x4e   :  { %171 = vmatpush2.msra.mxu0 %v76_v4 }
  0x4f   :  { %173 = vmatmul.mubr.f32.vlgmr.msra.gmra.mxu0 %v42_v5 }
 0x10f   :  { %v174_v28 = vpop.f32.mrf.mxu0 }
 0x110   :  { %v189_v29 = vrot.slane %v174_v28, %v1275_v25  ;;  %v182_v34 = vcombine.high %v174_v28, %v174_v28 }
 0x111   :  { %v176_v48 = vpop.f32.mrf.mxu0 }
 0x112   :  { %v197_v31 = vcombine.high %v189_v29, %v189_v29  ;;  %v205_v32 = vrot.slane %v189_v29, %v1275_v25  ;;  %v196_v38 = vrot.slane %v182_v34, %v1275_v25  ;;  %v295_v54 = vrot.slane %v176_v48, %v1275_v25 }
 0x113   :  { %v288_v12 = vcombine.high %v176_v48, %v176_v48  ;;  %v1364_v48 = vld [vmem:[%s1466_s1 + $0x10] sm:$0xff] }
 0x114   :  { %v219_v35 = vrot.slane %v197_v31, %v1275_v25  ;;  %v227_v36 = vcombine.high %v205_v32, %v205_v32  ;;  %v234_v41 = vrot.slane %v205_v32, %v1280_v37  ;;  %v198_v43 = vcombine.high %v196_v38, %v196_v38 }
 0x115   :  { %v212_v45 = vrot.slane %v196_v38, %v1275_v25  ;;  %v311_v60 = vrot.slane %v295_v54, %v1275_v25  ;;  %v303_v13 = vcombine.high %v295_v54, %v295_v54  ;;  %v302_v24 = vrot.slane %v288_v12, %v1275_v25  ;;  %v1385_v54 = vld [vmem:[%s1466_s1 + $0x20] sm:$0xff] }
 0x116   :  { %v238_v39 = vrot.slane %v219_v35, %v1280_v37  ;;  %v242_v40 = vrot.slane %v227_v36, %v1280_v37  ;;  %v229_v44 = vcombine.high %v219_v35, %v219_v35  ;;  %v271_v49 = vadd.f32 %v234_v41, %v179_v42 }
 0x117   :  { %v226_v50 = vrot.slane %v198_v43, %v1275_v25  ;;  %v228_v52 = vcombine.high %v212_v45, %v212_v45  ;;  %v250_v53 = vrot.slane %v212_v45, %v1280_v37  ;;  %v340_v0 = vrot.slane %v311_v60, %v1280_v37 }
 0x118   :  { %v272_v46 = vadd.f32 %v238_v39, %v179_v42  ;;  %v273_v47 = vadd.f32 %v242_v40, %v179_v42  ;;  %v246_v51 = vrot.slane %v229_v44, %v1280_v37  ;;  %v325_v28 = vrot.slane %v303_v13, %v1275_v25 }
 0x119   :  { %v230_v55 = vcombine.high %v226_v50, %v226_v50  ;;  %v254_v56 = vrot.slane %v226_v50, %v1280_v37  ;;  %v258_v58 = vrot.slane %v228_v52, %v1280_v37  ;;  %v275_v59 = vadd.f32 %v250_v53, %v179_v42  ;;  %v1371_v50 = vld [vmem:[%s1466_s1 + $0x8] sm:$0xff]  ;;  %v1378_v52 = vld [vmem:[%s1466_s1 + $0x18] sm:$0xff] }
 0x11a   :  { %1012 = vtanh.f32 %v272_v46  ;;  %v274_v57 = vadd.f32 %v246_v51, %v179_v42  ;;  %v377_v3 = vadd.f32 %v340_v0, %v1302_v1  ;;  %v333_v29 = vcombine.high %v311_v60, %v311_v60  ;;  %v1406_v60 = vld [vmem:[%s1466_s1 + $0x38] sm:$0xff] }
 0x11b   :  { %1014 = vtanh.f32 %v273_v47  ;;  %v262_v61 = vrot.slane %v230_v55, %v1280_v37  ;;  %v276_v62 = vadd.f32 %v254_v56, %v179_v42  ;;  %v277_v63 = vadd.f32 %v258_v58, %v179_v42  ;;  %v1392_v56 = vld [vmem:[%s1466_s1 + $0x28] sm:$0xff]  ;;  %v1399_v58 = vld [vmem:[%s1466_s1 + $0x30] sm:$0xff] }
 0x11c   :  { %1016 = vtanh.f32 %v271_v49  ;;  %v344_v32 = vrot.slane %v325_v28, %v1280_v37  ;;  %v318_v35 = vrot.slane %v302_v24, %v1275_v25  ;;  %v348_v36 = vrot.slane %v333_v29, %v1280_v37 }
 0x11d   :  { %1018 = vtanh.f32 %v274_v57  ;;  %v278_v2 = vadd.f32 %v262_v61, %v179_v42  ;;  %v777_v49 = vsel %vm685_vm0, %v1364_v48, 0.0  ;;  %v774_v51 = vsel %vm685_vm0, %v1371_v50, 0.0 }
 0x11e   :  { %1020 = vtanh.f32 %v275_v59  ;;  %v378_v39 = vadd.f32 %v344_v32, %v1302_v1  ;;  %v334_v40 = vcombine.high %v318_v35, %v318_v35  ;;  %v356_v41 = vrot.slane %v318_v35, %v1280_v37  ;;  %778 = vadd.xlane.f32.xlu1 %v777_v49 }
 0x11f   :  { %1022 = vtanh.f32 %v276_v62  ;;  %v780_v53 = vsel %vm685_vm0, %v1378_v52, 0.0  ;;  %v783_v55 = vsel %vm685_vm0, %v1385_v54, 0.0  ;;  %v786_v57 = vsel %vm685_vm0, %v1392_v56, 0.0 }
 0x120   :  { %1024 = vtanh.f32 %v277_v63  ;;  %v364_v43 = vrot.slane %v334_v40, %v1280_v37  ;;  %v381_v44 = vadd.f32 %v356_v41, %v1302_v1  ;;  %v789_v59 = vsel %vm685_vm0, %v1399_v58, 0.0 }
 0x121   :  { %1026 = vtanh.f32 %v278_v2  ;;  %v792_v61 = vsel %vm685_vm0, %v1406_v60, 0.0  ;;  %v628_v12 = vstv %s1471_s6 }
 0x122   :  { %1028 = vtanh.f32 %v377_v3  ;;  %v383_v45 = vadd.f32 %v364_v43, %v1302_v1  ;;  %781 = vadd.xlane.f32.xlu1 %v780_v53 }
 0x123   :  { %1030 = vtanh.f32 %v378_v39 }
 0x126   :  { %787 = vadd.xlane.f32.xlu1 %v786_v57 }
 0x127   :  { %v1013_v4 = vpop.eup %1012 }
 0x128   :  { %v1015_v5 = vpop.eup %1014 }
 0x129   :  { %v1017_v9 = vpop.eup %1016 }
 0x12a   :  { %951 = vmatprep.mubr.f32.mxu1 %v1017_v9  ;;  %v1019_v22 = vpop.eup %1018  ;;  %793 = vadd.xlane.f32.xlu1 %v792_v61 }
 0x12b   :  { %952 = vmatmul.mubr.f32.vlgmr.msra.gmra.mxu1 %v1013_v4  ;;  %v1021_v23 = vpop.eup %1020 }
 0x12c   :  { %964 = vmatpush3.msra.mxu1 %v1160_v26  ;;  %954 = vmatprep.mubr.f32.mxu1 %v1015_v5  ;;  %v1023_v26 = vpop.eup %1022 }
 0x12d   :  { %965 = vmatprep.subr.mxu1 %v1165_v27  ;;  %v1025_v31 = vpop.eup %1024 }
 0x12e   :  { %966 = vmatpush3.msra.mxu1 %v1165_v27  ;;  %v304_v27 = vcombine.high %v302_v24, %v302_v24  ;;  %v1027_v34 = vpop.eup %1026 }
 0x12f   :  { %967 = vmatprep.subr.mxu1 %v1172_v30  ;;  %955 = vmatmul.mubr.f32.gmra.mxu1 %v1019_v22 }
 0x130   :  { %968 = vmatpush3.msra.mxu1 %v1172_v30  ;;  %957 = vmatprep.mubr.f32.mxu1 %v1021_v23  ;;  %v335_v30 = vcombine.high %v325_v28, %v325_v28 }
 0x131   :  { %969 = vmatprep.subr.mxu1 %v1179_v33 }
 0x132   :  { %970 = vmatpush3.msra.mxu1 %v1179_v33  ;;  %v1029_v33 = vpop.eup %1028  ;;  %v352_v38 = vrot.slane %v335_v30, %v1280_v37 }
 0x133   :  { %971 = vmatprep.subr.mxu1 %v1191_v6  ;;  %958 = vmatmul.mubr.f32.gmra.mxu1 %v1023_v26 }
 0x134   :  { %972 = vmatpush3.msra.mxu1 %v1191_v6  ;;  %960 = vmatprep.mubr.f32.mxu1 %v1025_v31  ;;  %v332_v6 = vrot.slane %v304_v27, %v1275_v25  ;;  %v380_v42 = vadd.f32 %v352_v38, %v1302_v1 }
 0x135   :  { %973 = vmatprep.subr.mxu1 %v1198_v7 }
 0x136   :  { %974 = vmatpush3.msra.mxu1 %v1198_v7  ;;  %v379_v7 = vadd.f32 %v348_v36, %v1302_v1  ;;  %v360_v25 = vrot.slane %v332_v6, %v1280_v37 }
 0x137   :  { %975 = vmatprep.subr.mxu1 %v1205_v8  ;;  %961 = vmatmul.mubr.f32.gmra.mxu1 %v1027_v34 }
 0x138   :  { %976 = vmatpush3.msra.mxu1 %v1205_v8  ;;  %995 = vmatprep.mubr.f32.mxu1 %v1029_v33  ;;  %v336_v8 = vcombine.high %v332_v6, %v332_v6  ;;  %1032 = vtanh.f32 %v379_v7 }
 0x139   :  { %977 = vmatprep.subr.mxu1 %v1212_v10  ;;  %1034 = vtanh.f32 %v380_v42 }
 0x13a   :  { %978 = vmatpush3.msra.mxu1 %v1212_v10  ;;  %v368_v10 = vrot.slane %v336_v8, %v1280_v37  ;;  %1036 = vtanh.f32 %v381_v44 }
 0x13b   :  { %979 = vmatprep.subr.mxu1 %v1219_v11 }
 0x13c   :  { %980 = vmatpush3.msra.mxu1 %v1219_v11  ;;  %v382_v11 = vadd.f32 %v360_v25, %v1302_v1 }
 0x13d   :  { %981 = vmatprep.subr.mxu1 %v1226_v14 }
 0x13e   :  { %982 = vmatpush3.msra.mxu1 %v1226_v14  ;;  %v384_v14 = vadd.f32 %v368_v10, %v1302_v1  ;;  %1038 = vtanh.f32 %v382_v11 }
 0x13f   :  { %983 = vmatprep.subr.mxu1 %v1235_v16  ;;  %1040 = vtanh.f32 %v383_v45 }
 0x140   :  { %984 = vmatpush3.msra.mxu1 %v1235_v16  ;;  %1042 = vtanh.f32 %v384_v14  ;;  %v1031_v16 = vpop.eup %1030 }
 0x141   :  { %985 = vmatprep.subr.mxu1 %v1242_v17 }
 0x142   :  { %986 = vmatpush3.msra.mxu1 %v1242_v17 }
 0x143   :  { %987 = vmatprep.subr.mxu1 %v1249_v18 }
 0x144   :  { %988 = vmatpush3.msra.mxu1 %v1249_v18 }
 0x145   :  { %989 = vmatprep.subr.mxu1 %v1255_v19  ;;  %v1033_v17 = vpop.eup %1032 }
 0x146   :  { %990 = vmatpush3.msra.mxu1 %v1255_v19  ;;  %v1035_v18 = vpop.eup %1034 }
 0x147   :  { %991 = vmatprep.subr.mxu1 %v1261_v20  ;;  %v1037_v37 = vpop.eup %1036 }
 0x148   :  { %992 = vmatpush3.msra.mxu1 %v1261_v20  ;;  %v1357_v20 = vld [vmem:[%s1466_s1] sm:$0xff]  ;;  %s1110_s1 = smov [#allocation6]  }
 0x149   :  { %993 = vmatprep.subr.mxu1 %v1268_v21  ;;  %s862_s6 = sshll.u32 %s1110_s1, 4  ;;  %s863_s6 = int_to_ptr.vmem [resolvable:$true] %s862_s6 }
 0x14a   :  { %994 = vmatpush3.msra.mxu1 %v1268_v21  ;;  %v771_v21 = vsel %vm685_vm0, %v1357_v20, 0.0  ;;  %s1082_s12 = scalar_lea.vmem %s863_s6, 16  ;;  %s1086_s13 = scalar_lea.vmem %s863_s6, 32 }
 0x14b   :  { %996 = vmatmul.mubr.f32.vlgmr.msra.gmra.mxu1 %v1031_v16  ;;  %v1039_v46 = vpop.eup %1038  ;;  %772 = vadd.xlane.f32.xlu0 %v771_v21  ;;  %p1083_p5 = scmp.ne.s32.totalorder %s863_s6, %s1082_s12  ;;  %p1087_p6 = scmp.lt.s32.totalorder %s863_s6, %s863_s6 }
 0x14c   :  { %998 = vmatprep.mubr.f32.mxu1 %v1033_v17  ;;  %v1041_v47 = vpop.eup %1040  ;;  %p1088_p7 = scmp.lt.s32.totalorder %s1086_s13, %s1082_s12 }
 0x14d   :  { %v1043_v19 = vpop.eup %1042 }
 0x14e   :  { %p1089_p8 = por %p1088_p7, %p1087_p6 }
 0x14f   :  { %999 = vmatmul.mubr.f32.gmra.mxu1 %v1035_v18  ;;  %775 = vadd.xlane.f32.xlu0 %v774_v51 }
 0x150   :  { %1001 = vmatprep.mubr.f32.mxu1 %v1037_v37  ;;  %p1090_p9 = pnand %p1089_p8, %p1083_p5 }
 0x153   :  { %1002 = vmatmul.mubr.f32.gmra.mxu1 %v1039_v46  ;;  %784 = vadd.xlane.f32.xlu0 %v783_v55 }
 0x154   :  { %1004 = vmatprep.mubr.f32.mxu1 %v1041_v47 }
 0x157   :  { %1005 = vmatmul.mubr.f32.gmra.mxu1 %v1043_v19  ;;  %790 = vadd.xlane.f32.xlu0 %v789_v59 }
 0x1a7   :  { %v779_v17 = vpop.xlane.xlu1 %778 }
 0x1a8   :  { %v814_v47 = vrot.slane %v779_v17, %v1228_v15 }
 0x1ab   :  { %v782_v51 = vpop.xlane.xlu1 %781 }
 0x1ac   :  { %v818_v55 = vrot.slane %v782_v51, %v1228_v15 }
 0x1d4   :  { %v773_v45 = vpop.xlane.xlu0 %772 }
 0x1d5   :  { %v806_v37 = vrot.slane %v773_v45, %v1228_v15 }
 0x1d8   :  { %v776_v19 = vpop.xlane.xlu0 %775 }
 0x1d9   :  { %v810_v49 = vrot.slane %v776_v19, %v1228_v15 }
 0x1db   :  { %v835_v61 = vsel %vm752_vm1, %v810_v49, %v806_v37 }
 0x1eb   :  { %v953_v62 = vpop.f32.mrf.mxu1 }
 0x1ed   :  { %v475_v63 = vpop.f32.mrf.mxu1 }
 0x1ef   :  { %v956_v0 = vpop.f32.mrf.mxu1 }
 0x1f1   :  { %v485_v1 = vpop.f32.mrf.mxu1 }
 0x1f3   :  { %v959_v2 = vpop.f32.mrf.mxu1 }
 0x1f5   :  { %v495_v3 = vpop.f32.mrf.mxu1 }
 0x1f7   :  { %v962_v4 = vpop.f32.mrf.mxu1 }
 0x1f9   :  { %v505_v5 = vpop.f32.mrf.mxu1 }
 0x20b   :  { %v997_v9 = vpop.f32.mrf.mxu1 }
 0x20c   :  { %v620_v13 = vsub.f32 %v953_v62, %v997_v9 }
 0x20d   :  { %v580_v22 = vpop.f32.mrf.mxu1 }
 0x20e   :  { %v630_v23 = vadd.f32 %v628_v12, %v620_v13  ;;  %v619_v24 = vsub.f32 %v475_v63, %v580_v22  ;;  %v836_v63 = vsel %vm754_vm2, %v814_v47, %v835_v61 }
 0x20f   :  { %v1000_v28 = vpop.f32.mrf.mxu1 }
 0x210   :  { %v638_v26 = vmul.f32 0.5, %v630_v23  ;;  %v629_v29 = vadd.f32 %v628_v12, %v619_v24  ;;  %v622_v31 = vsub.f32 %v956_v0, %v1000_v28  ;;  %v785_v0 = vpop.xlane.xlu0 %784  ;;  %v788_v24 = vpop.xlane.xlu1 %787 }
 0x211   :  { %v590_v27 = vpop.f32.mrf.mxu1  ;;  %v822_v9 = vrot.slane %v785_v0, %v1228_v15 }
 0x212   :  { %1044 = vtanh.f32 %v638_v26  ;;  %v637_v30 = vmul.f32 0.5, %v629_v29  ;;  %v632_v32 = vadd.f32 %v628_v12, %v622_v31  ;;  %v621_v34 = vsub.f32 %v485_v1, %v590_v27 }
 0x213   :  { %v1003_v35 = vpop.f32.mrf.mxu1 }
 0x214   :  { %1046 = vtanh.f32 %v637_v30  ;;  %v640_v36 = vmul.f32 0.5, %v632_v32  ;;  %v631_v33 = vadd.f32 %v628_v12, %v621_v34  ;;  %v624_v6 = vsub.f32 %v959_v2, %v1003_v35  ;;  %v791_v27 = vpop.xlane.xlu0 %790 }
 0x215   :  { %v600_v38 = vpop.f32.mrf.mxu1 }
 0x216   :  { %1048 = vtanh.f32 %v640_v36  ;;  %v639_v39 = vmul.f32 0.5, %v631_v33  ;;  %v634_v40 = vadd.f32 %v628_v12, %v624_v6  ;;  %v623_v41 = vsub.f32 %v495_v3, %v600_v38 }
 0x217   :  { %v1006_v7 = vpop.f32.mrf.mxu1  ;;  %v830_v38 = vrot.slane %v791_v27, %v1228_v15 }
 0x218   :  { %1050 = vtanh.f32 %v639_v39  ;;  %v642_v8 = vmul.f32 0.5, %v634_v40  ;;  %v633_v25 = vadd.f32 %v628_v12, %v623_v41  ;;  %v626_v42 = vsub.f32 %v962_v4, %v1006_v7  ;;  %v794_v7 = vpop.xlane.xlu1 %793 }
 0x219   :  { %v610_v43 = vpop.f32.mrf.mxu1 }
 0x21a   :  { %1052 = vtanh.f32 %v642_v8  ;;  %v641_v44 = vmul.f32 0.5, %v633_v25  ;;  %v636_v10 = vadd.f32 %v628_v12, %v626_v42  ;;  %v625_v11 = vsub.f32 %v505_v5, %v610_v43 }
 0x21b   :  { %v837_v5 = vsel %vm756_vm3, %v818_v55, %v836_v63 }
 0x21c   :  { %1054 = vtanh.f32 %v641_v44  ;;  %v644_v14 = vmul.f32 0.5, %v636_v10  ;;  %v635_v16 = vadd.f32 %v628_v12, %v625_v11  ;;  %v838_v32 = vsel %vm758_vm4, %v822_v9, %v837_v5 }
 0x21d   :  { %v834_v10 = vrot.slane %v794_v7, %v1228_v15 }
 0x21e   :  { %1056 = vtanh.f32 %v644_v14  ;;  %v643_v18 = vmul.f32 0.5, %v635_v16 }
 0x21f   :  { %v1045_v46 = vpop.eup %1044 }
 0x220   :  { %1058 = vtanh.f32 %v643_v18  ;;  %v654_v21 = vadd.f32 1.0, %v1045_v46 }
 0x221   :  { %v1047_v53 = vpop.eup %1046 }
 0x222   :  { %v653_v57 = vadd.f32 1.0, %v1047_v53  ;;  %v662_v59 = vmul.f32 0.5, %v654_v21 }
 0x223   :  { %v1049_v62 = vpop.eup %1048 }
 0x224   :  { %v661_v1 = vmul.f32 0.5, %v653_v57  ;;  %v678_v2 = vmul.f32 %v1371_v50, %v662_v59  ;;  %v656_v3 = vadd.f32 1.0, %v1049_v62 }
 0x225   :  { %v1051_v4 = vpop.eup %1050 }
 0x226   :  { %v677_v12 = vmul.f32 %v1357_v20, %v661_v1  ;;  %v655_v13 = vadd.f32 1.0, %v1051_v4  ;;  %v689_v22 = vsel %vm685_vm0, %v678_v2, 0.0  ;;  %v664_v23 = vmul.f32 0.5, %v656_v3 }
 0x227   :  { %v1053_v28 = vpop.eup %1052  ;;  %690 = vadd.xlane.f32.xlu1 %v689_v22  ;;  %v826_v20 = vrot.slane %v788_v24, %v1228_v15 }
 0x228   :  { %v663_v26 = vmul.f32 0.5, %v655_v13  ;;  %v686_v29 = vsel %vm685_vm0, %v677_v12, 0.0  ;;  %v680_v50 = vmul.f32 %v1378_v52, %v664_v23  ;;  %v658_v31 = vadd.f32 1.0, %v1053_v28 }
 0x229   :  { %v1055_v30 = vpop.eup %1054  ;;  %687 = vadd.xlane.f32.xlu0 %v686_v29  ;;  %v839_v25 = vsel %vm760_vm5, %v826_v20, %v838_v32 }
 0x22a   :  { %v679_v34 = vmul.f32 %v1364_v48, %v663_v26  ;;  %v695_v35 = vsel %vm685_vm0, %v680_v50, 0.0  ;;  %v666_v36 = vmul.f32 0.5, %v658_v31  ;;  %v657_v33 = vadd.f32 1.0, %v1055_v30 }
 0x22b   :  { %v1057_v6 = vpop.eup %1056  ;;  %696 = vadd.xlane.f32.xlu1 %v695_v35  ;;  %v840_v14 = vsel %vm762_vm6, %v830_v38, %v839_v25 }
 0x22c   :  { %v692_v52 = vsel %vm685_vm0, %v679_v34, 0.0  ;;  %v682_v39 = vmul.f32 %v1392_v56, %v666_v36  ;;  %v665_v40 = vmul.f32 0.5, %v657_v33  ;;  %v660_v41 = vadd.f32 1.0, %v1057_v6 }
 0x22d   :  { %v1059_v8 = vpop.eup %1058  ;;  %693 = vadd.xlane.f32.xlu0 %v692_v52 }
 0x22e   :  { %v701_v48 = vsel %vm685_vm0, %v682_v39, 0.0  ;;  %v681_v42 = vmul.f32 %v1385_v54, %v665_v40  ;;  %v668_v43 = vmul.f32 0.5, %v660_v41  ;;  %v659_v44 = vadd.f32 1.0, %v1059_v8 }
 0x22f   :  { %702 = vadd.xlane.f32.xlu1 %v701_v48  ;;  %v841_v54 = vsel %vm764_vm7, %v834_v10, %v840_v14 }
 0x230   :  { %v698_v56 = vsel %vm685_vm0, %v681_v42, 0.0  ;;  %v684_v11 = vmul.f32 %v1406_v60, %v668_v43  ;;  %v667_v45 = vmul.f32 0.5, %v659_v44  ;;  %v843_v37 = vsel %vm767_vm8, %v841_v54, 0.0 }
 0x231   :  { %699 = vadd.xlane.f32.xlu0 %v698_v56 }
 0x232   :  { %v707_v16 = vsel %vm685_vm0, %v684_v11, 0.0  ;;  %v683_v17 = vmul.f32 %v1399_v58, %v667_v45 }
 0x233   :  { %708 = vadd.xlane.f32.xlu1 %v707_v16 }
 0x234   :  { %v704_v18 = vsel %vm685_vm0, %v683_v17, 0.0 }
 0x235   :  { %705 = vadd.xlane.f32.xlu0 %v704_v18 }
 0x239   :  { %844 = vadd.xlane.f32.xlu0 %v843_v37 }
 0x2b0   :  { %v691_v46 = vpop.xlane.xlu1 %690 }
 0x2b1   :  { %v727_v21 = vrot.slane %v691_v46, %v1228_v15 }
 0x2b2   :  { %v688_v60 = vpop.xlane.xlu0 %687 }
 0x2b3   :  { %v723_v47 = vrot.slane %v688_v60, %v1228_v15 }
 0x2b4   :  { %v697_v19 = vpop.xlane.xlu1 %696 }
 0x2b5   :  { %v753_v51 = vsel %vm752_vm1, %v727_v21, %v723_v47  ;;  %v735_v57 = vrot.slane %v697_v19, %v1228_v15 }
 0x2b6   :  { %v694_v49 = vpop.xlane.xlu0 %693 }
 0x2b7   :  { %v731_v58 = vrot.slane %v694_v49, %v1228_v15 }
 0x2b8   :  { %v703_v53 = vpop.xlane.xlu1 %702 }
 0x2b9   :  { %v755_v55 = vsel %vm754_vm2, %v731_v58, %v753_v51  ;;  %v743_v1 = vrot.slane %v703_v53, %v1228_v15 }
 0x2ba   :  { %v700_v59 = vpop.xlane.xlu0 %699  ;;  %v757_v62 = vsel %vm756_vm3, %v735_v57, %v755_v55 }
 0x2bb   :  { %v739_v61 = vrot.slane %v700_v59, %v1228_v15 }
 0x2bc   :  { %v709_v0 = vpop.xlane.xlu1 %708 }
 0x2bd   :  { %v759_v63 = vsel %vm758_vm4, %v739_v61, %v757_v62  ;;  %v751_v4 = vrot.slane %v709_v0, %v1228_v15 }
 0x2be   :  { %v706_v2 = vpop.xlane.xlu0 %705  ;;  %v761_v5 = vsel %vm760_vm5, %v743_v1, %v759_v63 }
 0x2bf   :  { %v747_v3 = vrot.slane %v706_v2, %v1228_v15 }
 0x2c1   :  { %v763_v9 = vsel %vm762_vm6, %v747_v3, %v761_v5 }
 0x2c2   :  { %v765_v12 = vsel %vm764_vm7, %v751_v4, %v763_v9  ;;  %v845_v22 = vpop.xlane.xlu0 %844 }
 0x2c3   :  { %v768_v13 = vsel %vm767_vm8, %v765_v12, 0.0  ;;  %1060 = vrcp.f32 %v845_v22 }
 0x2c4   :  { %769 = vadd.xlane.f32.xlu1 %v768_v13 }
 0x2d0   :  { %v1061_v23 = vpop.eup %1060 }
 0x34d   :  { %v770_v24 = vpop.xlane.xlu1 %769 }
 0x34e   :  { %v847_v28 = vmul.f32 %v1061_v23, %v770_v24 }
 0x350   :  { %v852_v26 = vrot.slane %v847_v28, %v1228_v15 }
 0x352   :  { %855 = vst.msk [vmem:[#allocation6] sm:$0x1] %vm854_vm9, %v852_v26 }
 0x353   :  { %1093 = shalt.err (!%p1090_p9)
}
 0x354   :  { %865 = dma.vmem_to_hbm [thread:$0]  %s863_s6, 16, %s1472_s7, [#allocation5]  }
 0x355   :  { %1104 = dma.done.wait [#allocation5], 16  }
 0x356   :  { %1105 = vsyncadd [#allocation5], 4294967280 }
 0x357   :  { %869 = vsyncpa [#allocation4], 1 }
 0x358   :  { %870 = vsyncpa [#allocation5], 1 }

</bundles_post_ra>
